<compile_context>
chip_gen: v6e
topology: v6e:2x2x1
jax: 0.10.0
libtpu: 0.0.40
codegen_flags: <defaults>
</compile_context>

<pallas_src>
import jax
import jax.numpy as jnp
from jax.experimental import pallas as pl
from jax.experimental.pallas import tpu as pltpu

_LANE_WIDTH = 128      # vreg lane width
_SUBLANE_ALIGN = 32    # covers f32 (8), bf16 (16) and int8 (32) sublane tiles


def _mlp_kernel(x_ref, w1_ref, b1_ref, w2_ref, b2_ref, o_ref):
    # In-kernel cast (matches torch's x.float(); no-op when x is already f32).
    x = x_ref[...].astype(jnp.float32)
    # fc1 (lane-folded): (tb, FOLD*D_in) @ (FOLD*D_in, FOLD*H) + (1, FOLD*H)
    h = jnp.dot(x, w1_ref[...], preferred_element_type=jnp.float32) + b1_ref[...]
    h = jnp.maximum(h, 0.0)  # relu
    # fc2 (lane-folded): (tb, FOLD*H) @ (FOLD*H, FOLD*D_out) + (1, FOLD*D_out)
    y = jnp.dot(h, w2_ref[...], preferred_element_type=jnp.float32) + b2_ref[...]
    o_ref[...] = y.astype(o_ref.dtype)


def prepare_linear_nn_params(w1, b1, w2, b2):
    """One-time conversion from PyTorch (out, in) weights to the lane-folded,
    MXU-friendly block-diagonal layout.  Call once at init, NOT per step.

    Returns:
      w1f : (FOLD*D_in, FOLD*H)    block-diagonal fc1 weight (transposed)
      b1f : (1, FOLD*H)            tiled fc1 bias
      w2f : (FOLD*H, FOLD*D_out)   block-diagonal fc2 weight (transposed)
      b2f : (1, FOLD*D_out)        tiled fc2 bias
    where FOLD = max(1, 128 // D_in) batch rows are packed per lane row.
    """
    w1t = jnp.asarray(w1, jnp.float32).T        # (D_in, H)
    w2t = jnp.asarray(w2, jnp.float32).T        # (H, D_out)
    b1 = jnp.asarray(b1, jnp.float32)
    b2 = jnp.asarray(b2, jnp.float32)

    d_in = w1t.shape[0]
    fold = max(1, _LANE_WIDTH // d_in)
    eye = jnp.eye(fold, dtype=jnp.float32)
    w1f = jnp.kron(eye, w1t)                    # block-diagonal
    w2f = jnp.kron(eye, w2t)
    b1f = jnp.tile(b1, fold)[None, :]
    b2f = jnp.tile(b2, fold)[None, :]
    return w1f, b1f, w2f, b2f


def _choose_tile(n_rows, max_rows):
    """Leading-axis (folded-batch) tile size.

    - small inputs  -> one full-extent block (no (8,128) constraint, minimal
      per-step overhead);
    - medium inputs -> split into two blocks so v7x's two TensorCores both get
      work via dimension_semantics=("parallel",);
    - large inputs  -> cap at max_rows: big tiles amortize the ~0.35 us
      per-grid-step overhead while the double-buffered footprint stays far
      below v5e's 16 MiB default scoped-VMEM limit.
    """
    if n_rows <= 1024:
        return n_rows
    if n_rows <= 2 * max_rows:
        half = -(-n_rows // 2)
        return -(-half // _SUBLANE_ALIGN) * _SUBLANE_ALIGN
    return max_rows


def linear_nn_forward(x, w1f, b1f, w2f, b2f, *, max_tile_rows=2048):
    """Fused fc2(relu(fc1(x))) Pallas kernel (lane-folded).

    x    : (B, D_in)  float32 or bf16 (cast to f32 inside the kernel)
    w1f, b1f, w2f, b2f : outputs of prepare_linear_nn_params()
    returns (B, D_out) float32
    """
    B, d_in = x.shape
    kf, hf = w1f.shape                  # (fold*D_in, fold*H)
    _, of = w2f.shape                   # (fold*H, fold*D_out)
    fold = kf // d_in
    hidden = hf // fold
    d_out = of // fold

    # Pad batch to a multiple of the lane fold, then pack `fold` rows per lane
    # row: (B, D_in) -> (B/fold, fold*D_in).  Contiguous reshape => free.
    b_pad = -(-B // fold) * fold
    if b_pad != B:
        x = jnp.pad(x, ((0, b_pad - B), (0, 0)))
    b4 = b_pad // fold
    xf = x.reshape(b4, fold * d_in)

    max_tile_rows = max(_SUBLANE_ALIGN,
                        (max_tile_rows // _SUBLANE_ALIGN) * _SUBLANE_ALIGN)
    tb = _choose_tile(b4, max_tile_rows)
    grid = (pl.cdiv(b4, tb),)

    flops = int(2 * B * (d_in * hidden + hidden * d_out))
    bytes_accessed = int(
        xf.size * jnp.dtype(xf.dtype).itemsize                     # x in
        + 4 * (w1f.size + b1f.size + w2f.size + b2f.size)          # params in
        + b4 * of * 4                                              # y out
    )

    vmem = pltpu.MemorySpace.VMEM
    yf = pl.pallas_call(
        _mlp_kernel,
        out_shape=jax.ShapeDtypeStruct((b4, of), jnp.float32),
        grid=grid,
        in_specs=[
            pl.BlockSpec((tb, kf), lambda i: (i, 0), memory_space=vmem),
            # Tiny weights/biases are re-DMA'd every step (~2 KB; negligible).
            pl.BlockSpec((kf, hf), lambda i: (0, 0), memory_space=vmem),
            pl.BlockSpec((1, hf), lambda i: (0, 0), memory_space=vmem),
            pl.BlockSpec((hf, of), lambda i: (0, 0), memory_space=vmem),
            pl.BlockSpec((1, of), lambda i: (0, 0), memory_space=vmem),
        ],
        out_specs=pl.BlockSpec((tb, of), lambda i: (i, 0), memory_space=vmem),
        compiler_params=pltpu.CompilerParams(
            dimension_semantics=("parallel",),
        ),
        cost_estimate=pl.CostEstimate(
            flops=flops, transcendentals=0, bytes_accessed=bytes_accessed
        ),
    )(xf, w1f, b1f, w2f, b2f)

    # (B/fold, fold*D_out) -> (B_pad, D_out); drop pad rows.  Contiguous.
    y = yf.reshape(b_pad, d_out)
    return y[:B] if b_pad != B else y


def init_linear_nn_params(key, input_dim, output_dim, hidden_dim=8):
    """Xavier-uniform init in PyTorch (out, in) layout (matches
    LinearNN.initialize_xavier shapes; biases zero)."""
    k1, k2 = jax.random.split(key)

    def xavier(k, fan_out, fan_in):
        bound = jnp.sqrt(6.0 / (fan_in + fan_out))
        return jax.random.uniform(
            k, (fan_out, fan_in), jnp.float32, minval=-bound, maxval=bound
        )

    w1 = xavier(k1, hidden_dim, input_dim)    # fc1.weight: (H, D_in)
    b1 = jnp.zeros((hidden_dim,), jnp.float32)
    w2 = xavier(k2, output_dim, hidden_dim)   # fc2.weight: (D_out, H)
    b2 = jnp.zeros((output_dim,), jnp.float32)
    return w1, b1, w2, b2


def _reference(x, w1, b1, w2, b2):
    hi = jax.lax.Precision.HIGHEST
    xf = x.astype(jnp.float32)
    h = jnp.maximum(jnp.dot(xf, w1.T, precision=hi) + b1, 0.0)
    return jnp.dot(h, w2.T, precision=hi) + b2


if __name__ == "__main__":
    key = jax.random.PRNGKey(0)
    kp, kx_small, kx_big = jax.random.split(key, 3)

    input_dim, hidden_dim, output_dim = 32, 8, 4

    # PyTorch-layout params, converted to the lane-folded layout exactly once.
    w1, b1, w2, b2 = init_linear_nn_params(kp, input_dim, output_dim, hidden_dim)
    params = prepare_linear_nn_params(w1, b1, w2, b2)

    # Small batch: single full-extent block; also exercises the pad-to-fold
    # path (6 rows -> 8).
    x_small = jax.random.normal(kx_small, (6, input_dim), jnp.float32)
    out_s = jax.block_until_ready(linear_nn_forward(x_small, *params))
    ref_s = _reference(x_small, w1, b1, w2, b2)
    assert out_s.shape == (6, output_dim)
    assert jnp.allclose(out_s, ref_s, atol=1e-4, rtol=1e-4)

    # PPO-rollout-sized batch: multi-step parallel grid (both v7x TCs) with a
    # ragged, masked last block.
    x_big = jax.random.normal(kx_big, (10000, input_dim), jnp.float32)
    out_b = jax.block_until_ready(linear_nn_forward(x_big, *params))
    ref_b = _reference(x_big, w1, b1, w2, b2)
    assert out_b.shape == (10000, output_dim)
    assert jnp.allclose(out_b, ref_b, atol=1e-4, rtol=1e-4)

    print("KERNEL_OK")
</pallas_src>

<mosaic_0001>
module attributes {stable_mosaic.version = 11 : i64} {
  func.func @_mlp_kernel(%arg0: i32, %arg1: memref<2x128xf32, #tpu.memory_space<vmem>>, %arg2: memref<128x32xf32, #tpu.memory_space<vmem>>, %arg3: memref<1x32xf32, #tpu.memory_space<vmem>>, %arg4: memref<32x16xf32, #tpu.memory_space<vmem>>, %arg5: memref<1x16xf32, #tpu.memory_space<vmem>>, %arg6: memref<2x16xf32, #tpu.memory_space<vmem>>) attributes {dimension_semantics = [#tpu.dimension_semantics<parallel>], iteration_bounds = array<i64: 1>, scalar_prefetch = 0 : i64, scratch_operands = 0 : i64, tpu.core_type = #tpu.core_type<tc>, window_params = [{transform_indices = @transform_0, window_bounds = array<i64: 2, 128>}, {pipeline_mode = #tpu.pipeline_mode<synchronous>, transform_indices = @transform_1, window_bounds = array<i64: 128, 32>}, {pipeline_mode = #tpu.pipeline_mode<synchronous>, transform_indices = @transform_2, window_bounds = array<i64: 1, 32>}, {pipeline_mode = #tpu.pipeline_mode<synchronous>, transform_indices = @transform_3, window_bounds = array<i64: 32, 16>}, {pipeline_mode = #tpu.pipeline_mode<synchronous>, transform_indices = @transform_4, window_bounds = array<i64: 1, 16>}, {transform_indices = @transform_5, window_bounds = array<i64: 2, 16>}]} {
    %c0 = arith.constant 0 : index
    %c0_0 = arith.constant 0 : index
    %0 = vector.load %arg1[%c0, %c0_0] : memref<2x128xf32, #tpu.memory_space<vmem>>, vector<2x128xf32>
    %c0_1 = arith.constant 0 : index
    %c0_2 = arith.constant 0 : index
    %1 = vector.load %arg2[%c0_1, %c0_2] : memref<128x32xf32, #tpu.memory_space<vmem>>, vector<128x32xf32>
    %cst = arith.constant dense<0.000000e+00> : vector<2x32xf32>
    %2 = tpu.matmul %0, %1, %cst {dimension_numbers = #tpu.dot_dimension_numbers<[1], [0], [0], [1], [0, 0, 1, 1], [], []>} : vector<2x128xf32>, vector<128x32xf32>, vector<2x32xf32> -> vector<2x32xf32>
    %c0_3 = arith.constant 0 : index
    %c0_4 = arith.constant 0 : index
    %3 = vector.load %arg3[%c0_3, %c0_4] : memref<1x32xf32, #tpu.memory_space<vmem>>, vector<1x32xf32>
    %4 = vector.broadcast %3 : vector<1x32xf32> to vector<2x32xf32>
    %5 = arith.addf %2, %4 : vector<2x32xf32>
    %cst_5 = arith.constant 0.000000e+00 : f32
    %6 = vector.broadcast %cst_5 : f32 to vector<2x32xf32>
    %7 = arith.maximumf %5, %6 : vector<2x32xf32>
    %c0_6 = arith.constant 0 : index
    %c0_7 = arith.constant 0 : index
    %8 = vector.load %arg4[%c0_6, %c0_7] : memref<32x16xf32, #tpu.memory_space<vmem>>, vector<32x16xf32>
    %cst_8 = arith.constant dense<0.000000e+00> : vector<2x16xf32>
    %9 = tpu.matmul %7, %8, %cst_8 {dimension_numbers = #tpu.dot_dimension_numbers<[1], [0], [0], [1], [0, 0, 1, 1], [], []>} : vector<2x32xf32>, vector<32x16xf32>, vector<2x16xf32> -> vector<2x16xf32>
    %c0_9 = arith.constant 0 : index
    %c0_10 = arith.constant 0 : index
    %10 = vector.load %arg5[%c0_9, %c0_10] : memref<1x16xf32, #tpu.memory_space<vmem>>, vector<1x16xf32>
    %11 = vector.broadcast %10 : vector<1x16xf32> to vector<2x16xf32>
    %12 = arith.addf %9, %11 : vector<2x16xf32>
    %c0_11 = arith.constant 0 : index
    %c0_12 = arith.constant 0 : index
    %13 = vector.load %arg6[%c0_11, %c0_12] : memref<2x16xf32, #tpu.memory_space<vmem>>, vector<2x16xf32>
    tpu.vector_store %arg6[%c0_11, %c0_12], %12 {strides = array<i32>} : memref<2x16xf32, #tpu.memory_space<vmem>>, vector<2x16xf32>,
    return
  }
  func.func @transform_0(%arg0: i32) -> (i32, i32) {
    %c0_i32 = arith.constant 0 : i32
    %c0_i32_0 = arith.constant 0 : i32
    return %arg0, %c0_i32 : i32, i32
  }
  func.func @transform_1(%arg0: i32) -> (i32, i32) {
    %c0_i32 = arith.constant 0 : i32
    %c0_i32_0 = arith.constant 0 : i32
    %c0_i32_1 = arith.constant 0 : i32
    return %c0_i32, %c0_i32_0 : i32, i32
  }
  func.func @transform_2(%arg0: i32) -> (i32, i32) {
    %c0_i32 = arith.constant 0 : i32
    %c0_i32_0 = arith.constant 0 : i32
    %c0_i32_1 = arith.constant 0 : i32
    return %c0_i32, %c0_i32_0 : i32, i32
  }
  func.func @transform_3(%arg0: i32) -> (i32, i32) {
    %c0_i32 = arith.constant 0 : i32
    %c0_i32_0 = arith.constant 0 : i32
    %c0_i32_1 = arith.constant 0 : i32
    return %c0_i32, %c0_i32_0 : i32, i32
  }
  func.func @transform_4(%arg0: i32) -> (i32, i32) {
    %c0_i32 = arith.constant 0 : i32
    %c0_i32_0 = arith.constant 0 : i32
    %c0_i32_1 = arith.constant 0 : i32
    return %c0_i32, %c0_i32_0 : i32, i32
  }
  func.func @transform_5(%arg0: i32) -> (i32, i32) {
    %c0_i32 = arith.constant 0 : i32
    %c0_i32_0 = arith.constant 0 : i32
    return %arg0, %c0_i32 : i32, i32
  }
}

</mosaic_0001>

<bundles_post_ra>
// kernel: tpu_custom_call.1
= control target key start
LH: loop header
LB: loop body
LE: loop exit
PB: predicated region body
PF: predicated region fallthrough
CT: control target
= control target key end

     0   :  { %v313_v1 = vmov 0.0   ;;  %vm314_vm0 = vmmov 0   ;;  %s418_s0 = inlined_call_operand.vmem [shape: f32[2,128], index: 0, kind: input, shape index: {}]   ;;  %s419_s1 = inlined_call_operand.vmem [shape: f32[128,32], index: 1, kind: input, shape index: {}]   ;;  %s420_s2 = inlined_call_operand.vmem [shape: f32[1,32], index: 2, kind: input, shape index: {}]   ;;  %s421_s3 = inlined_call_operand.vmem [shape: f32[32,16], index: 3, kind: input, shape index: {}]   ;;  %s422_s4 = inlined_call_operand.vmem [shape: f32[1,16], index: 4, kind: input, shape index: {}]   ;;  %s423_s5 = inlined_call_operand.hbm [shape: f32[2,16], index: 5, kind: output, shape index: {}]  }
   0x1   :  { %v37_v0 = vld [vmem:[%s419_s1 + $0x78] sm:$0xff]  ;;  %242 = vmatprep.subr.mxu0 %v313_v1  ;;  %v36_v2 = vld [vmem:[%s419_s1 + $0x70] sm:$0xff]  ;;  %274 = vmatprep.mubr.msk.f32.mxu0 %vm314_vm0, %v313_v1  ;;  %v35_v3 = vld [vmem:[%s419_s1 + $0x68] sm:$0xff] }
   0x2   :  { %243 = vmatpush3.msra.mxu0 %v37_v0  ;;  %277 = vmatprep.subr.mxu1 %v313_v1  ;;  %v34_v4 = vld [vmem:[%s419_s1 + $0x60] sm:$0xff]  ;;  %v119_v5 = vld [vmem:[%s421_s3 + $0x18] sm:$0xff] }
   0x3   :  { %244 = vmatprep.subr.mxu0 %v313_v1  ;;  %285 = vmatprep.mubr.msk.f32.mxu1 %vm314_vm0, %v313_v1 }
   0x4   :  { %245 = vmatpush3.msra.mxu0 %v36_v2  ;;  %278 = vmatpush3.msra.mxu1 %v119_v5 }
   0x5   :  { %246 = vmatprep.subr.mxu0 %v313_v1 }
   0x6   :  { %247 = vmatpush3.msra.mxu0 %v35_v3 }
   0x7   :  { %10 = vsyncpa [#allocation3], 0  ;;  %248 = vmatprep.subr.mxu0 %v313_v1  ;;  %v33_v6 = vld [vmem:[%s419_s1 + $0x58] sm:$0xff]  ;;  %279 = vmatprep.subr.mxu1 %v313_v1  ;;  %v32_v7 = vld [vmem:[%s419_s1 + $0x50] sm:$0xff]  ;;  %vm127_vm1 = vcmask 261120   ;;  %s315_s12 = smov [#allocation2]  }
   0x8   :  { %249 = vmatpush3.msra.mxu0 %v34_v4  ;;  %v31_v8 = vld [vmem:[%s419_s1 + $0x48] sm:$0xff]  ;;  %v30_v9 = vld [vmem:[%s419_s1 + $0x40] sm:$0xff]  ;;  %v29_v10 = vld [vmem:[%s419_s1 + $0x38] sm:$0xff]  ;;  %s209_s13 = sshll.u32 %s315_s12, 4  ;;  %vm201_vm2 = vcmask 123904   ;;  %s210_s13 = int_to_ptr.vmem [resolvable:$true] %s209_s13 }
   0x9   :  { %250 = vmatprep.subr.mxu0 %v313_v1  ;;  %v28_v11 = vld [vmem:[%s419_s1 + $0x30] sm:$0xff]  ;;  %v27_v12 = vld [vmem:[%s419_s1 + $0x28] sm:$0xff]  ;;  %v26_v13 = vld [vmem:[%s419_s1 + $0x20] sm:$0xff]  ;;  %p296_p1 = scmp.lt.s32.totalorder %s210_s13, %s210_s13 }
   0xa   :  { %251 = vmatpush3.msra.mxu0 %v33_v6  ;;  %v25_v14 = vld [vmem:[%s419_s1 + $0x18] sm:$0xff]  ;;  %v24_v15 = vld [vmem:[%s419_s1 + $0x10] sm:$0xff]  ;;  %v23_v16 = vld [vmem:[%s419_s1 + $0x8] sm:$0xff] }
   0xb   :  { %252 = vmatprep.subr.mxu0 %v313_v1  ;;  %v22_v17 = vld [vmem:[%s419_s1] sm:$0xff]  ;;  %v118_v19 = vld [vmem:[%s421_s3 + $0x10] sm:$0xff]  ;;  %v117_v20 = vld [vmem:[%s421_s3 + $0x8] sm:$0xff] }
   0xc   :  { %253 = vmatpush3.msra.mxu0 %v32_v7  ;;  %v21_v18 = vld [vmem:[%s418_s0] sm:$0x3]  ;;  %280 = vmatpush3.msra.mxu1 %v118_v19 }
   0xd   :  { %254 = vmatprep.subr.mxu0 %v313_v1  ;;  %281 = vmatprep.subr.mxu1 %v313_v1  ;;  %v116_v21 = vld [vmem:[%s421_s3] sm:$0xff]  ;;  %s291_s3 = scalar_lea.vmem %s210_s13, 32 }
   0xe   :  { %255 = vmatpush3.msra.mxu0 %v31_v8  ;;  %282 = vmatpush3.msra.mxu1 %v117_v20  ;;  %v217_v22 = vld [vmem:[%s420_s2] ss:$0 sm:$0xff]  ;;  %p292_p0 = scmp.ne.s32.totalorder %s210_s13, %s291_s3  ;;  %p297_p2 = scmp.lt.s32.totalorder %s291_s3, %s291_s3 }
   0xf   :  { %256 = vmatprep.subr.mxu0 %v313_v1  ;;  %283 = vmatprep.subr.mxu1 %v313_v1  ;;  %v218_v27 = vld [vmem:[%s422_s4] ss:$0 sm:$0xff] }
  0x10   :  { %257 = vmatpush3.msra.mxu0 %v30_v9  ;;  %284 = vmatpush3.msra.mxu1 %v116_v21  ;;  %p298_p3 = por %p297_p2, %p296_p1 }
  0x11   :  { %258 = vmatprep.subr.mxu0 %v313_v1 }
  0x12   :  { %259 = vmatpush3.msra.mxu0 %v29_v10  ;;  %p299_p4 = pnand %p298_p3, %p292_p0 }
  0x13   :  { %260 = vmatprep.subr.mxu0 %v313_v1 }
  0x14   :  { %261 = vmatpush3.msra.mxu0 %v28_v11 }
  0x15   :  { %262 = vmatprep.subr.mxu0 %v313_v1 }
  0x16   :  { %263 = vmatpush3.msra.mxu0 %v27_v12 }
  0x17   :  { %264 = vmatprep.subr.mxu0 %v313_v1 }
  0x18   :  { %265 = vmatpush3.msra.mxu0 %v26_v13 }
  0x19   :  { %266 = vmatprep.subr.mxu0 %v313_v1 }
  0x1a   :  { %267 = vmatpush3.msra.mxu0 %v25_v14 }
  0x1b   :  { %268 = vmatprep.subr.mxu0 %v313_v1 }
  0x1c   :  { %269 = vmatpush3.msra.mxu0 %v24_v15 }
  0x1d   :  { %270 = vmatprep.subr.mxu0 %v313_v1 }
  0x1e   :  { %271 = vmatpush3.msra.mxu0 %v23_v16 }
  0x1f   :  { %272 = vmatprep.subr.mxu0 %v313_v1 }
  0x20   :  { %273 = vmatpush3.msra.mxu0 %v22_v17 }
  0x21   :  { %275 = vmatmul.mubr.f32.vlgmr.msra.gmra.mxu0 %v21_v18 }
  0xe1   :  { %v111_v23 = vpop.f32.mrf.mxu0 }
  0xe2   :  { %v112_v24 = vadd.f32 %v217_v22, %v111_v23 }
  0xe3   :  { %v276_v25 = vpop.f32.mrf.mxu0 }
  0xe4   :  { %v115_v26 = vmax.f32 %v112_v24, 0.0 }
  0xe6   :  { %286 = vmatmul.mubr.msk.f32.vlgmr.msra.gmra.mxu1 %vm127_vm1, %v115_v26 }
 0x1a6   :  { %v197_v28 = vpop.f32.mrf.mxu1 }
 0x1a7   :  { %v198_v29 = vadd.f32 %v218_v27, %v197_v28 }
 0x1a8   :  { %v287_v30 = vpop.f32.mrf.mxu1 }
 0x1a9   :  { %202 = vst.msk [vmem:[#allocation2] sm:$0x3] %vm201_vm2, %v198_v29 }
 0x1aa   :  { %302 = shalt.err (!%p299_p4)
}
 0x1ab   :  { %212 = dma.vmem_to_hbm [thread:$0]  %s210_s13, 32, %s423_s5, [#allocation3]  }
 0x1ac   :  { %311 = dma.done.wait [#allocation3], 32  }
 0x1ad   :  { %312 = vsyncadd [#allocation3], 4294967264 }
 0x1ae   :  { %216 = vsyncpa [#allocation3], 1 }

</bundles_post_ra>
